<compile_context>
chip_gen: v5e
topology: v5e:2x2
jax: 0.10.0
libtpu: 0.0.40
codegen_flags: <defaults>
</compile_context>

<pallas_src>
import functools

import jax
import jax.numpy as jnp
from jax.experimental import pallas as pl
from jax.experimental.pallas import tpu as pltpu

_LANE = 128
_SMALL_INPUT_ELEMS = 16 * 1024  # below this, a fused XLA reduction beats pallas_call overhead


def _mse_kernel(p_ref, t_ref, o_ref, acc_ref, *, block_rows, valid_rows, needs_mask):
    """Accumulate sum((p - t)^2) over the row grid into an (8, 128) vreg-shaped slab."""
    i = pl.program_id(0)
    last = pl.num_programs(0) - 1

    @pl.when(i == 0)
    def _():
        acc_ref[...] = jnp.zeros_like(acc_ref)

    diff = p_ref[...].astype(jnp.float32) - t_ref[...].astype(jnp.float32)
    sq = diff * diff

    def _fold(x):
        # Fold the (block_rows, 128) tile into the (8, 128) accumulator using only
        # sublane-group elementwise adds (pure VPU work; no per-step XLU reduce).
        return jnp.sum(x.reshape(block_rows // 8, 8, _LANE), axis=0)

    if needs_mask:
        # Only the final (partial) block can hang past the end of the (rows, 128)
        # slab; mask it there and keep the hot loop mask-free.
        @pl.when(i < last)
        def _():
            acc_ref[...] += _fold(sq)

        @pl.when(i == last)
        def _():
            row = jax.lax.broadcasted_iota(jnp.int32, (block_rows, _LANE), 0) + i * block_rows
            acc_ref[...] += _fold(jnp.where(row < valid_rows, sq, 0.0))
    else:
        acc_ref[...] += _fold(sq)

    @pl.when(i == last)
    def _():
        # Single cross-lane/sublane reduction, paid once. Mean is taken in the wrapper.
        o_ref[...] = jnp.sum(acc_ref[...]).reshape(1, 1)


def _row_align(dtype):
    # Sublane packing: 8 rows for 32-bit, 16 for bf16/fp16, 32 for 8-bit types.
    return max(8, 32 // jnp.dtype(dtype).itemsize)


def mse_loss_pallas(preds, targets, *, target_block_bytes=2 * 1024 * 1024,
                    max_block_rows=8192, interpret=False):
    """MSE loss (mean reduction) matching torch.nn.MSELoss()(preds, targets)."""
    assert preds.shape == targets.shape, (preds.shape, targets.shape)
    n_elems = preds.size
    assert n_elems > 0

    align = _row_align(preds.dtype)

    # Flatten to a lane-dense (rows, 128) layout. Pad with zeros only when needed
    # (padded elements are equal in both operands -> zero contribution to the SSE).
    padded = -(-n_elems // _LANE) * _LANE
    rows = padded // _LANE
    if rows < align:                      # tiny inputs: guarantee a full sublane tile
        rows = align
        padded = rows * _LANE
    pad = padded - n_elems

    p = preds.reshape(-1)
    t = targets.reshape(-1)
    if pad:
        p = jnp.pad(p, (0, pad))
        t = jnp.pad(t, (0, pad))
    p2 = p.reshape(rows, _LANE)
    t2 = t.reshape(rows, _LANE)

    # Largest row tile that keeps (2 inputs x 2 pipeline buffers) comfortably inside
    # the scoped-VMEM budget on every generation (v5e 16 MiB / v6e 32 MiB / v7x 32 MiB).
    bytes_per_row = _LANE * jnp.dtype(preds.dtype).itemsize
    block_rows = int(min(max_block_rows, max(align, target_block_bytes // bytes_per_row)))
    block_rows = max(align, (block_rows // align) * align)
    rows_rounded = -(-rows // align) * align
    block_rows = min(block_rows, rows_rounded)

    grid = pl.cdiv(rows, block_rows)
    needs_mask = (rows % block_rows) != 0

    kernel = functools.partial(_mse_kernel, block_rows=block_rows,
                               valid_rows=rows, needs_mask=needs_mask)

    in_bytes = 2 * rows * bytes_per_row
    sse = pl.pallas_call(
        kernel,
        out_shape=jax.ShapeDtypeStruct((1, 1), jnp.float32),
        grid_spec=pltpu.PrefetchScalarGridSpec(
            num_scalar_prefetch=0,
            grid=(grid,),
            in_specs=[
                pl.BlockSpec((block_rows, _LANE), lambda i: (i, 0)),
                pl.BlockSpec((block_rows, _LANE), lambda i: (i, 0)),
            ],
            out_specs=pl.BlockSpec((1, 1), lambda i: (0, 0)),
            scratch_shapes=[pltpu.VMEM((8, _LANE), jnp.float32)],
        ),
        compiler_params=pltpu.CompilerParams(
            dimension_semantics=("arbitrary",),  # carried accumulator -> reduction axis
        ),
        cost_estimate=pl.CostEstimate(flops=3 * rows * _LANE, transcendentals=0,
                                      bytes_accessed=in_bytes + 4),
        interpret=interpret,
    )(p2, t2)

    return sse[0, 0] / jnp.float32(n_elems)


def mse_loss(preds, targets, *, min_pallas_elems=_SMALL_INPUT_ELEMS):
    """Shape-based dispatch: tiny inputs use XLA's fused reduction (kernel overhead dominates)."""
    if preds.size < min_pallas_elems:
        d = preds.astype(jnp.float32) - targets.astype(jnp.float32)
        return jnp.mean(d * d)
    return mse_loss_pallas(preds, targets)


class RegressionLoss:
    """JAX/Pallas port of physioex RegressionLoss: nn.MSELoss()(preds, targets); emb ignored."""

    def __init__(self, min_pallas_elems=_SMALL_INPUT_ELEMS):
        self.min_pallas_elems = min_pallas_elems

    def __call__(self, emb, preds, targets):
        # emb is ignored, exactly as in the PyTorch forward.
        return mse_loss(preds, targets, min_pallas_elems=self.min_pallas_elems)


if __name__ == "__main__":
    key = jax.random.PRNGKey(0)
    k_emb, k_p1, k_t1, k_p2, k_t2, k_p3, k_t3 = jax.random.split(key, 7)

    # 1) Module-level check at small shapes (Pallas path forced for the demo).
    batch, hidden, feat = 16, 32, 128
    emb = jax.random.normal(k_emb, (batch, hidden), dtype=jnp.float32)
    preds = jax.random.normal(k_p1, (batch, feat), dtype=jnp.float32)
    targets = jax.random.normal(k_t1, (batch, feat), dtype=jnp.float32)

    loss_fn = RegressionLoss(min_pallas_elems=0)  # force the Pallas kernel
    loss = loss_fn(emb, preds, targets)
    jax.block_until_ready(loss)
    ref = jnp.mean((preds - targets) ** 2)
    assert jnp.allclose(loss, ref, rtol=1e-5, atol=1e-6), (loss, ref)

    # 2) Ragged multi-step grid check (feature dim not a multiple of 128, masked tail,
    #    small tile -> several grid steps so both pl.when accumulation paths execute).
    p2 = jax.random.normal(k_p2, (1000, 96), dtype=jnp.float32)
    t2 = jax.random.normal(k_t2, (1000, 96), dtype=jnp.float32)
    l2 = mse_loss_pallas(p2, t2, target_block_bytes=32 * 1024)
    jax.block_until_ready(l2)
    r2 = jnp.mean((p2 - t2) ** 2)
    assert jnp.allclose(l2, r2, rtol=1e-5, atol=1e-6), (l2, r2)

    # 3) bf16 inputs (halves HBM traffic; accumulation stays f32 in-kernel).
    p3 = jax.random.normal(k_p3, (256, 256), dtype=jnp.float32).astype(jnp.bfloat16)
    t3 = jax.random.normal(k_t3, (256, 256), dtype=jnp.float32).astype(jnp.bfloat16)
    l3 = mse_loss_pallas(p3, t3)
    jax.block_until_ready(l3)
    r3 = jnp.mean((p3.astype(jnp.float32) - t3.astype(jnp.float32)) ** 2)
    assert jnp.allclose(l3, r3, rtol=1e-5, atol=1e-6), (l3, r3)

    print("KERNEL_OK")
</pallas_src>

<mosaic_0001>
module attributes {stable_mosaic.version = 11 : i64} {
  func.func @_mse_kernel(%arg0: i32, %arg1: memref<16x128xf32, #tpu.memory_space<vmem>>, %arg2: memref<16x128xf32, #tpu.memory_space<vmem>>, %arg3: memref<1x1xf32, #tpu.memory_space<vmem>>, %arg4: memref<8x128xf32, #tpu.memory_space<vmem>>) attributes {dimension_semantics = [#tpu.dimension_semantics<arbitrary>], iteration_bounds = array<i64: 1>, scalar_prefetch = 0 : i64, scratch_operands = 1 : i64, tpu.core_type = #tpu.core_type<tc>, window_params = [{transform_indices = @transform_0, window_bounds = array<i64: 16, 128>}, {transform_indices = @transform_1, window_bounds = array<i64: 16, 128>}, {pipeline_mode = #tpu.pipeline_mode<synchronous>, transform_indices = @transform_2, window_bounds = array<i64: 1, 1>}]} {
    %c0_i32 = arith.constant 0 : i32
    %0 = arith.cmpi eq, %arg0, %c0_i32 : i32
    %1 = arith.extui %0 : i1 to i32
    %c0_i32_0 = arith.constant 0 : i32
    %2 = arith.cmpi ne, %1, %c0_i32_0 : i32
    scf.if %2 {
      %cst_10 = arith.constant 0.000000e+00 : f32
      %15 = vector.broadcast %cst_10 : f32 to vector<8x128xf32>
      %c0_11 = arith.constant 0 : index
      %c0_12 = arith.constant 0 : index
      %16 = vector.load %arg4[%c0_11, %c0_12] : memref<8x128xf32, #tpu.memory_space<vmem>>, vector<8x128xf32>
      tpu.vector_store %arg4[%c0_11, %c0_12], %15 {strides = array<i32>} : memref<8x128xf32, #tpu.memory_space<vmem>>, vector<8x128xf32>,
    } else {
    }
    %c0 = arith.constant 0 : index
    %c0_1 = arith.constant 0 : index
    %3 = vector.load %arg1[%c0, %c0_1] : memref<16x128xf32, #tpu.memory_space<vmem>>, vector<16x128xf32>
    %c0_2 = arith.constant 0 : index
    %c0_3 = arith.constant 0 : index
    %4 = vector.load %arg2[%c0_2, %c0_3] : memref<16x128xf32, #tpu.memory_space<vmem>>, vector<16x128xf32>
    %5 = arith.subf %3, %4 : vector<16x128xf32>
    %6 = arith.mulf %5, %5 : vector<16x128xf32>
    %c0_4 = arith.constant 0 : index
    %c0_5 = arith.constant 0 : index
    %7 = vector.load %arg4[%c0_4, %c0_5] : memref<8x128xf32, #tpu.memory_space<vmem>>, vector<8x128xf32>
    %8 = vector.shape_cast %6 : vector<16x128xf32> to vector<2x8x128xf32>
    %cst = arith.constant dense<0.000000e+00> : vector<8x128xf32>
    %9 = vector.multi_reduction <add>, %8, %cst [0] : vector<2x8x128xf32> to vector<8x128xf32>
    %10 = arith.addf %7, %9 : vector<8x128xf32>
    %c0_6 = arith.constant 0 : index
    %c0_7 = arith.constant 0 : index
    %11 = vector.load %arg4[%c0_6, %c0_7] : memref<8x128xf32, #tpu.memory_space<vmem>>, vector<8x128xf32>
    tpu.vector_store %arg4[%c0_6, %c0_7], %10 {strides = array<i32>} : memref<8x128xf32, #tpu.memory_space<vmem>>, vector<8x128xf32>,
    %c0_i32_8 = arith.constant 0 : i32
    %12 = arith.cmpi eq, %arg0, %c0_i32_8 : i32
    %13 = arith.extui %12 : i1 to i32
    %c0_i32_9 = arith.constant 0 : i32
    %14 = arith.cmpi ne, %13, %c0_i32_9 : i32
    scf.if %14 {
      %c0_10 = arith.constant 0 : index
      %c0_11 = arith.constant 0 : index
      %15 = vector.load %arg4[%c0_10, %c0_11] : memref<8x128xf32, #tpu.memory_space<vmem>>, vector<8x128xf32>
      %16 = vector.shape_cast %15 : vector<8x128xf32> to vector<1x8x128xf32>
      %cst_12 = arith.constant dense<0.000000e+00> : vector<1xf32>
      %17 = vector.multi_reduction <add>, %16, %cst_12 [1, 2] : vector<1x8x128xf32> to vector<1xf32>
      %18 = vector.shape_cast %17 : vector<1xf32> to vector<1x1x1xf32>
      %19 = vector.extract %18[0, 0, 0] : f32 from vector<1x1x1xf32>
      %20 = vector.broadcast %19 : f32 to vector<1x1xf32>
      %c0_13 = arith.constant 0 : index
      %c0_14 = arith.constant 0 : index
      %21 = vector.load %arg3[%c0_13, %c0_14] : memref<1x1xf32, #tpu.memory_space<vmem>>, vector<1x1xf32>
      tpu.vector_store %arg3[%c0_13, %c0_14], %20 {strides = array<i32>} : memref<1x1xf32, #tpu.memory_space<vmem>>, vector<1x1xf32>,
    } else {
    }
    return
  }
  func.func @transform_0(%arg0: i32) -> (i32, i32) {
    %c0_i32 = arith.constant 0 : i32
    %c0_i32_0 = arith.constant 0 : i32
    return %arg0, %c0_i32 : i32, i32
  }
  func.func @transform_1(%arg0: i32) -> (i32, i32) {
    %c0_i32 = arith.constant 0 : i32
    %c0_i32_0 = arith.constant 0 : i32
    return %arg0, %c0_i32 : i32, i32
  }
  func.func @transform_2(%arg0: i32) -> (i32, i32) {
    %c0_i32 = arith.constant 0 : i32
    %c0_i32_0 = arith.constant 0 : i32
    %c0_i32_1 = arith.constant 0 : i32
    return %c0_i32, %c0_i32_0 : i32, i32
  }
}

</mosaic_0001>

<bundles_post_ra>
// kernel: tpu_custom_call.1
= control target key start
LH: loop header
LB: loop body
LE: loop exit
PB: predicated region body
PF: predicated region fallthrough
CT: control target
= control target key end

     0   :  { %7 = vsyncpa [#allocation4], 0  ;;  %s209_s0 = inlined_call_operand.hbm [shape: f32[16,128], index: 0, kind: input, shape index: {}]   ;;  %s210_s1 = inlined_call_operand.hbm [shape: f32[16,128], index: 1, kind: input, shape index: {}]   ;;  %s211_s2 = inlined_call_operand.hbm [shape: f32[1,1], index: 2, kind: output, shape index: {}]  }
   0x1   :  { %8 = vsyncpa [#allocation7], 0 }
   0x2   :  { %9 = vsyncpa [#allocation5], 0  ;;  %s14_s11 = sshll.u32 %s209_s0, 4  ;;  %s180_s12 = smov [#allocation3]   ;;  %s15_s11 = int_to_ptr.hbm [resolvable:$true] %s14_s11 }
   0x3   :  { %s16_s13 = sshll.u32 %s180_s12, 4  ;;  %s27_s16 = sshll.u32 %s210_s1, 4  ;;  %s17_s13 = int_to_ptr.vmem [resolvable:$true] %s16_s13  ;;  %s28_s16 = int_to_ptr.hbm [resolvable:$true] %s27_s16 }
   0x4   :  { %s181_s17 = smov 128   ;;  %s182_s18 = smov 8  }
   0x5   :  { %22 = dma.hbm_to_vmem [thread:$0]  %s15_s11, 256, %s17_s13, [#allocation4], %s181_s17, %s181_s17, %s182_s18  }
   0x6   :  { %s183_s19 = smov [#allocation6]  }
   0x7   :  { %s29_s20 = sshll.u32 %s183_s19, 4  ;;  %s30_s20 = int_to_ptr.vmem [resolvable:$true] %s29_s20 }
   0x8   :  { %35 = dma.hbm_to_vmem [thread:$0]  %s28_s16, 256, %s30_s20, [#allocation7], %s181_s17, %s181_s17, %s182_s18  }
   0x9   :  { %174 = dma.done.wait [#allocation4], 256  }
   0xa   :  { %175 = vsyncadd [#allocation4], 4294967040 }
   0xb   :  { %176 = dma.done.wait [#allocation7], 256  }
   0xc   :  { %177 = vsyncadd [#allocation7], 4294967040  ;;  %v49_v0 = vld [vmem:[#allocation3] sm:$0xff]  ;;  %v50_v1 = vld [vmem:[#allocation3 + $0x8] sm:$0xff]  ;;  %s184_s0 = smov [#allocation8]   ;;  %s84_s23 = sshll.u32 %s211_s2, 4  ;;  %s85_s23 = int_to_ptr.hbm [resolvable:$true] %s84_s23 }
   0xd   :  { %v51_v2 = vld [vmem:[#allocation6] sm:$0xff]  ;;  %v52_v3 = vld [vmem:[#allocation6 + $0x8] sm:$0xff]  ;;  %s82_s1 = sshll.u32 %s184_s0, 4  ;;  %vm75_vm0 = vcmask 0   ;;  %s83_s1 = int_to_ptr.vmem [resolvable:$true] %s82_s1 }
   0xe   :  { %v53_v4 = vsub.f32 %v49_v0, %v51_v2  ;;  %v54_v5 = vsub.f32 %v50_v1, %v52_v3 }
  0x10   :  { %v55_v6 = vmul.f32 %v53_v4, %v53_v4  ;;  %v56_v7 = vmul.f32 %v54_v5, %v54_v5 }
  0x12   :  { %v58_v8 = vadd.f32 %v56_v7, %v55_v6 }
  0x14   :  { %65 = vadd.xlane.f32.xlu0 %v58_v8 }
  0x87   :  { %v66_v9 = vpop.xlane.xlu0 %65 }
  0x88   :  { %v67_v10 = vrot.slane %v66_v9, 4 }
  0x8a   :  { %v68_v11 = vadd.f32 %v67_v10, %v66_v9 }
  0x8c   :  { %v69_v12 = vrot.slane %v68_v11, 2 }
  0x8e   :  { %v70_v13 = vadd.f32 %v69_v12, %v68_v11 }
  0x90   :  { %v71_v14 = vrot.slane %v70_v13, 1 }
  0x92   :  { %v72_v15 = vadd.f32 %v71_v14, %v70_v13 }
  0x94   :  { %95 = vpush %v72_v15 }
  0xc5   :  { %s96_s24 = spop %95 }
  0xc6   :  { %v74_v16 = vstv %s96_s24 }
  0xc7   :  { %76 = vst.msk [vmem:[#allocation8] sm:$0x1] %vm75_vm0, %v74_v16 }
  0xc8   :  { %87 = dma.vmem_to_hbm [thread:$0]  %s83_s1, 16, %s85_s23, [#allocation5]  }
  0xc9   :  { %178 = dma.done.wait [#allocation5], 16  }
  0xca   :  { %179 = vsyncadd [#allocation5], 4294967280 }
  0xcb   :  { %92 = vsyncpa [#allocation4], 1 }
  0xcc   :  { %93 = vsyncpa [#allocation7], 1 }
  0xcd   :  { %94 = vsyncpa [#allocation5], 1 }

</bundles_post_ra>
